<compile_context>
chip_gen: v7x
topology: tpu7x:2x2x1
jax: 0.10.0
libtpu: 0.0.40
codegen_flags: <defaults>
</compile_context>

<pallas_src>
import functools

import jax
import jax.numpy as jnp
from jax.experimental import pallas as pl
from jax.experimental.pallas import tpu as pltpu  # noqa: F401  (TPU backend)

KSIZE = 5
PAD = KSIZE // 2
LN_EPS = 1e-5


def _conv_block_kernel(xp_ref, w_ref, b_ref, g_ref, beta_ref, o_ref, *,
                       batch: int, length: int):
    # xp_ref:   (C, B*Lp)  channel-major, per-sample 'same'-padded input
    # w_ref:    (C, K*C)   conv weight, column index = k*C_in + i
    # b_ref:    (C, 1)     conv bias
    # g_ref:    (C, L)     LayerNorm gamma
    # beta_ref: (C, L)     LayerNorm beta
    # o_ref:    (C, B*L)   output (channel-major, batch folded into lanes)
    L = length
    Lp = L + 2 * PAD
    C = o_ref.shape[0]

    xp = xp_ref[...]                                   # native dtype for the MXU

    # im2col: rows ordered (tap k, in-channel i); columns ordered (sample b, pos l).
    # All static lane slices of the pre-padded block already resident in VMEM.
    taps = []
    for k in range(KSIZE):
        taps.append(jnp.concatenate(
            [xp[:, b * Lp + k: b * Lp + k + L] for b in range(batch)], axis=1))
    cols = jnp.concatenate(taps, axis=0)               # (K*C, B*L)

    # One MXU matmul serves all taps, channels and batch elements.
    acc = jnp.dot(w_ref[...], cols, preferred_element_type=jnp.float32)  # (C, B*L)
    acc = acc + b_ref[...].astype(jnp.float32)         # (C, 1) broadcasts over lanes
    h = jnp.maximum(acc, 0.0)                          # ReLU, f32

    gamma = g_ref[...].astype(jnp.float32)
    beta = beta_ref[...].astype(jnp.float32)
    inv_n = 1.0 / float(C * L)

    outs = []
    for b in range(batch):                             # static unroll, tiny B
        hb = h[:, b * L:(b + 1) * L]                   # (C, L)
        # One-pass LayerNorm stats over the full (C, L) slab of this sample.
        mean = jnp.sum(hb) * inv_n
        ex2 = jnp.sum(hb * hb) * inv_n
        var = jnp.maximum(ex2 - mean * mean, 0.0)
        inv = jax.lax.rsqrt(var + LN_EPS)
        yb = (hb - mean) * inv * gamma + beta
        # TODO(synk): Dropout1d is identity in eval mode; training-mode
        # per-channel dropout with 1/(1-p) scaling is not implemented here.
        xres = xp[:, b * Lp + PAD: b * Lp + PAD + L].astype(jnp.float32)
        outs.append(yb + xres)                         # residual add

    o_ref[...] = jnp.concatenate(outs, axis=1).astype(o_ref.dtype)  # single store


@jax.jit
def conv_block_forward(x, w, b, gamma, beta):
    """x: (B, C, L); w: (C, C, K); b: (C,); gamma/beta: (C, L) -> (B, C, L)."""
    B, C, L = x.shape
    Lp = L + 2 * PAD

    # Layout plumbing in XLA (cheap at these sizes): per-sample 'same' padding,
    # channel-major transpose, batch folded into the lane axis.
    xp = jnp.pad(x, ((0, 0), (0, 0), (PAD, PAD)))                 # (B, C, Lp)
    xp2d = jnp.transpose(xp, (1, 0, 2)).reshape(C, B * Lp)        # (C, B*Lp)
    # (C_out, C_in, K) -> (C_out, K*C_in) with column index k*C_in + i.
    w2 = jnp.transpose(w, (0, 2, 1)).reshape(C, KSIZE * C)
    b2 = b.reshape(C, 1)

    out2d = pl.pallas_call(
        functools.partial(_conv_block_kernel, batch=B, length=L),
        out_shape=jax.ShapeDtypeStruct((C, B * L), x.dtype),
    )(xp2d, w2, b2, gamma, beta)

    return jnp.transpose(out2d.reshape(C, B, L), (1, 0, 2))        # back to (B, C, L)


def _reference(x, w, b, gamma, beta):
    # Pure-JAX reference for verification.
    B, C, L = x.shape
    xpad = jnp.pad(x, ((0, 0), (0, 0), (PAD, PAD)))
    conv = jnp.zeros((B, C, L), jnp.float32)
    for k in range(KSIZE):
        conv = conv + jnp.einsum("oc,bcl->bol", w[:, :, k], xpad[:, :, k:k + L])
    conv = conv + b[None, :, None]
    h = jnp.maximum(conv, 0.0)
    mean = jnp.mean(h, axis=(1, 2), keepdims=True)
    var = jnp.mean((h - mean) ** 2, axis=(1, 2), keepdims=True)
    y = (h - mean) * jax.lax.rsqrt(var + LN_EPS) * gamma[None] + beta[None]
    return y + x


if __name__ == "__main__":
    # Module config: input_channels=4, input_length=16, dropout_rate=0.1 (eval).
    B, C, L = 2, 4, 16

    key = jax.random.PRNGKey(0)
    kx, kw, kb = jax.random.split(key, 3)

    x = jax.random.normal(kx, (B, C, L), dtype=jnp.float32)

    # PyTorch Conv1d default init: U(-bound, bound), bound = 1/sqrt(C_in * K).
    bound = 1.0 / jnp.sqrt(jnp.float32(C * KSIZE))
    w = jax.random.uniform(kw, (C, C, KSIZE), jnp.float32, -bound, bound)
    b = jax.random.uniform(kb, (C,), jnp.float32, -bound, bound)

    # LayerNorm((C, L)) default affine params.
    gamma = jnp.ones((C, L), jnp.float32)
    beta = jnp.zeros((C, L), jnp.float32)

    out = jax.block_until_ready(conv_block_forward(x, w, b, gamma, beta))

    ref = _reference(x, w, b, gamma, beta)
    assert out.shape == (B, C, L)
    assert jnp.allclose(out, ref, atol=1e-4, rtol=1e-4), "mismatch vs reference"

    print("KERNEL_OK")
</pallas_src>

<mosaic_0001>
module attributes {stable_mosaic.version = 11 : i64} {
  func.func @_conv_block_kernel(%arg0: memref<4x40xf32, #tpu.memory_space<vmem>>, %arg1: memref<4x20xf32, #tpu.memory_space<vmem>>, %arg2: memref<4x1xf32, #tpu.memory_space<vmem>>, %arg3: memref<4x16xf32, #tpu.memory_space<vmem>>, %arg4: memref<4x16xf32, #tpu.memory_space<vmem>>, %arg5: memref<4x32xf32, #tpu.memory_space<vmem>>) attributes {dimension_semantics = [], scalar_prefetch = 0 : i64, scratch_operands = 0 : i64, tpu.core_type = #tpu.core_type<tc>} {
    %c0 = arith.constant 0 : index
    %c0_0 = arith.constant 0 : index
    %0 = vector.load %arg0[%c0, %c0_0] : memref<4x40xf32, #tpu.memory_space<vmem>>, vector<4x40xf32>
    %1 = vector.extract_strided_slice %0 {offsets = [0, 0], sizes = [4, 16], strides = [1, 1]} : vector<4x40xf32> to vector<4x16xf32>
    %2 = vector.extract_strided_slice %0 {offsets = [0, 20], sizes = [4, 16], strides = [1, 1]} : vector<4x40xf32> to vector<4x16xf32>
    %3 = tpu.concatenate %1, %2 in 1 : vector<4x16xf32>, vector<4x16xf32> -> vector<4x32xf32>
    %4 = vector.extract_strided_slice %0 {offsets = [0, 1], sizes = [4, 16], strides = [1, 1]} : vector<4x40xf32> to vector<4x16xf32>
    %5 = vector.extract_strided_slice %0 {offsets = [0, 21], sizes = [4, 16], strides = [1, 1]} : vector<4x40xf32> to vector<4x16xf32>
    %6 = tpu.concatenate %4, %5 in 1 : vector<4x16xf32>, vector<4x16xf32> -> vector<4x32xf32>
    %7 = vector.extract_strided_slice %0 {offsets = [0, 2], sizes = [4, 16], strides = [1, 1]} : vector<4x40xf32> to vector<4x16xf32>
    %8 = vector.extract_strided_slice %0 {offsets = [0, 22], sizes = [4, 16], strides = [1, 1]} : vector<4x40xf32> to vector<4x16xf32>
    %9 = tpu.concatenate %7, %8 in 1 : vector<4x16xf32>, vector<4x16xf32> -> vector<4x32xf32>
    %10 = vector.extract_strided_slice %0 {offsets = [0, 3], sizes = [4, 16], strides = [1, 1]} : vector<4x40xf32> to vector<4x16xf32>
    %11 = vector.extract_strided_slice %0 {offsets = [0, 23], sizes = [4, 16], strides = [1, 1]} : vector<4x40xf32> to vector<4x16xf32>
    %12 = tpu.concatenate %10, %11 in 1 : vector<4x16xf32>, vector<4x16xf32> -> vector<4x32xf32>
    %13 = vector.extract_strided_slice %0 {offsets = [0, 4], sizes = [4, 16], strides = [1, 1]} : vector<4x40xf32> to vector<4x16xf32>
    %14 = vector.extract_strided_slice %0 {offsets = [0, 24], sizes = [4, 16], strides = [1, 1]} : vector<4x40xf32> to vector<4x16xf32>
    %15 = tpu.concatenate %13, %14 in 1 : vector<4x16xf32>, vector<4x16xf32> -> vector<4x32xf32>
    %16 = tpu.concatenate %3, %6, %9, %12, %15 in 0 : vector<4x32xf32>, vector<4x32xf32>, vector<4x32xf32>, vector<4x32xf32>, vector<4x32xf32> -> vector<20x32xf32>
    %c0_1 = arith.constant 0 : index
    %c0_2 = arith.constant 0 : index
    %17 = vector.load %arg1[%c0_1, %c0_2] : memref<4x20xf32, #tpu.memory_space<vmem>>, vector<4x20xf32>
    %cst = arith.constant dense<0.000000e+00> : vector<4x32xf32>
    %18 = tpu.matmul %17, %16, %cst {dimension_numbers = #tpu.dot_dimension_numbers<[1], [0], [0], [1], [0, 0, 1, 1], [], []>} : vector<4x20xf32>, vector<20x32xf32>, vector<4x32xf32> -> vector<4x32xf32>
    %c0_3 = arith.constant 0 : index
    %c0_4 = arith.constant 0 : index
    %19 = vector.load %arg2[%c0_3, %c0_4] : memref<4x1xf32, #tpu.memory_space<vmem>>, vector<4x1xf32>
    %20 = vector.broadcast %19 : vector<4x1xf32> to vector<4x32xf32>
    %21 = arith.addf %18, %20 : vector<4x32xf32>
    %cst_5 = arith.constant 0.000000e+00 : f32
    %22 = vector.broadcast %cst_5 : f32 to vector<4x32xf32>
    %23 = arith.maximumf %21, %22 : vector<4x32xf32>
    %c0_6 = arith.constant 0 : index
    %c0_7 = arith.constant 0 : index
    %24 = vector.load %arg3[%c0_6, %c0_7] : memref<4x16xf32, #tpu.memory_space<vmem>>, vector<4x16xf32>
    %c0_8 = arith.constant 0 : index
    %c0_9 = arith.constant 0 : index
    %25 = vector.load %arg4[%c0_8, %c0_9] : memref<4x16xf32, #tpu.memory_space<vmem>>, vector<4x16xf32>
    %26 = vector.extract_strided_slice %23 {offsets = [0, 0], sizes = [4, 16], strides = [1, 1]} : vector<4x32xf32> to vector<4x16xf32>
    %27 = vector.shape_cast %26 : vector<4x16xf32> to vector<1x4x16xf32>
    %cst_10 = arith.constant dense<0.000000e+00> : vector<1xf32>
    %28 = vector.multi_reduction <add>, %27, %cst_10 [1, 2] : vector<1x4x16xf32> to vector<1xf32>
    %29 = vector.shape_cast %28 : vector<1xf32> to vector<1x1x1xf32>
    %30 = vector.extract %29[0, 0, 0] : f32 from vector<1x1x1xf32>
    %cst_11 = arith.constant 1.562500e-02 : f32
    %31 = arith.mulf %30, %cst_11 : f32
    %32 = arith.mulf %26, %26 : vector<4x16xf32>
    %33 = vector.shape_cast %32 : vector<4x16xf32> to vector<1x4x16xf32>
    %cst_12 = arith.constant dense<0.000000e+00> : vector<1xf32>
    %34 = vector.multi_reduction <add>, %33, %cst_12 [1, 2] : vector<1x4x16xf32> to vector<1xf32>
    %35 = vector.shape_cast %34 : vector<1xf32> to vector<1x1x1xf32>
    %36 = vector.extract %35[0, 0, 0] : f32 from vector<1x1x1xf32>
    %cst_13 = arith.constant 1.562500e-02 : f32
    %37 = arith.mulf %36, %cst_13 : f32
    %38 = arith.mulf %31, %31 : f32
    %39 = arith.subf %37, %38 : f32
    %cst_14 = arith.constant 0.000000e+00 : f32
    %40 = arith.maximumf %39, %cst_14 : f32
    %cst_15 = arith.constant 9.99999974E-6 : f32
    %41 = arith.addf %40, %cst_15 : f32
    %42 = math.rsqrt %41 : f32
    %43 = vector.broadcast %31 : f32 to vector<4x16xf32>
    %44 = arith.subf %26, %43 : vector<4x16xf32>
    %45 = vector.broadcast %42 : f32 to vector<4x16xf32>
    %46 = arith.mulf %44, %45 : vector<4x16xf32>
    %47 = arith.mulf %46, %24 : vector<4x16xf32>
    %48 = arith.addf %47, %25 : vector<4x16xf32>
    %49 = vector.extract_strided_slice %0 {offsets = [0, 2], sizes = [4, 16], strides = [1, 1]} : vector<4x40xf32> to vector<4x16xf32>
    %50 = arith.addf %48, %49 : vector<4x16xf32>
    %51 = vector.extract_strided_slice %23 {offsets = [0, 16], sizes = [4, 16], strides = [1, 1]} : vector<4x32xf32> to vector<4x16xf32>
    %52 = vector.shape_cast %51 : vector<4x16xf32> to vector<1x4x16xf32>
    %cst_16 = arith.constant dense<0.000000e+00> : vector<1xf32>
    %53 = vector.multi_reduction <add>, %52, %cst_16 [1, 2] : vector<1x4x16xf32> to vector<1xf32>
    %54 = vector.shape_cast %53 : vector<1xf32> to vector<1x1x1xf32>
    %55 = vector.extract %54[0, 0, 0] : f32 from vector<1x1x1xf32>
    %cst_17 = arith.constant 1.562500e-02 : f32
    %56 = arith.mulf %55, %cst_17 : f32
    %57 = arith.mulf %51, %51 : vector<4x16xf32>
    %58 = vector.shape_cast %57 : vector<4x16xf32> to vector<1x4x16xf32>
    %cst_18 = arith.constant dense<0.000000e+00> : vector<1xf32>
    %59 = vector.multi_reduction <add>, %58, %cst_18 [1, 2] : vector<1x4x16xf32> to vector<1xf32>
    %60 = vector.shape_cast %59 : vector<1xf32> to vector<1x1x1xf32>
    %61 = vector.extract %60[0, 0, 0] : f32 from vector<1x1x1xf32>
    %cst_19 = arith.constant 1.562500e-02 : f32
    %62 = arith.mulf %61, %cst_19 : f32
    %63 = arith.mulf %56, %56 : f32
    %64 = arith.subf %62, %63 : f32
    %cst_20 = arith.constant 0.000000e+00 : f32
    %65 = arith.maximumf %64, %cst_20 : f32
    %cst_21 = arith.constant 9.99999974E-6 : f32
    %66 = arith.addf %65, %cst_21 : f32
    %67 = math.rsqrt %66 : f32
    %68 = vector.broadcast %56 : f32 to vector<4x16xf32>
    %69 = arith.subf %51, %68 : vector<4x16xf32>
    %70 = vector.broadcast %67 : f32 to vector<4x16xf32>
    %71 = arith.mulf %69, %70 : vector<4x16xf32>
    %72 = arith.mulf %71, %24 : vector<4x16xf32>
    %73 = arith.addf %72, %25 : vector<4x16xf32>
    %74 = vector.extract_strided_slice %0 {offsets = [0, 22], sizes = [4, 16], strides = [1, 1]} : vector<4x40xf32> to vector<4x16xf32>
    %75 = arith.addf %73, %74 : vector<4x16xf32>
    %76 = tpu.concatenate %50, %75 in 1 : vector<4x16xf32>, vector<4x16xf32> -> vector<4x32xf32>
    %c0_22 = arith.constant 0 : index
    %c0_23 = arith.constant 0 : index
    %77 = vector.load %arg5[%c0_22, %c0_23] : memref<4x32xf32, #tpu.memory_space<vmem>>, vector<4x32xf32>
    tpu.vector_store %arg5[%c0_22, %c0_23], %76 {strides = array<i32>} : memref<4x32xf32, #tpu.memory_space<vmem>>, vector<4x32xf32>,
    return
  }
}

</mosaic_0001>

<bundles_post_ra>
// kernel: conv_block_forward.1
= control target key start
LH: loop header
LB: loop body
LE: loop exit
PB: predicated region body
PF: predicated region fallthrough
CT: control target
= control target key end

     0   :  { %s295_s20 = smov 125   ;;  %s296_s21 = smov 127   ;;  %v297_v1 = vmov 0.0|0.0   ;;  %vm300_vm0 = vmmov 0   ;;  %v301_v2 = vmov 0.0   ;;  %v304_v3 = vmov 0   ;;  %s391_s0 = inlined_call_operand.vmem [shape: f32[4,40], index: 0, kind: input, shape index: {}]   ;;  %s392_s2 = inlined_call_operand.vmem [shape: f32[4,1], index: 2, kind: input, shape index: {}]   ;;  %s393_s1 = inlined_call_operand.vmem [shape: f32[4,20], index: 1, kind: input, shape index: {}]   ;;  %s394_s3 = inlined_call_operand.vmem [shape: f32[4,16], index: 3, kind: input, shape index: {}]   ;;  %s395_s4 = inlined_call_operand.vmem [shape: f32[4,16], index: 4, kind: input, shape index: {}]   ;;  %s396_s5 = inlined_call_operand.vmem [shape: f32[4,32], index: 5, kind: output, shape index: {}]  }
   0x1   :  { %v20_v0 = vld [vmem:[%s391_s0] sm:$0xf]  ;;  %260 = vmatprep.subr.bf16.mxu0 %v297_v1  ;;  %s298_s22 = smov 121   ;;  %s299_s23 = smov 123   ;;  %257 = vmatprep.mubr.msk.f32.mxu0 %vm300_vm0, %v301_v2  ;;  %vm25_vm1 = vcmask 130048   ;;  %vm58_vm2 = vcmask 1043456  }
   0x2   :  { %41 = vrot.lane.b32.xlu1 %v20_v0, %s295_s20  ;;  %27 = vrot.lane.b32.xlu0 %v20_v0, %s296_s21  ;;  %s302_s24 = smov 126   ;;  %s303_s25 = smov 124   ;;  %v62_v4 = vld [vmem:[%s392_s2] sm:$0xf]  ;;  %vm68_vm3 = vcmask 162816   ;;  %vm148_vm4 = vcmask 125952  }
   0x3   :  { %290 = vset.pattern.permute.xlu0 %v304_v3  ;;  %s305_s0 = smov 120   ;;  %s306_s26 = smov 122   ;;  %v61_v22 = vld [vmem:[%s393_s1] sm:$0xf]  ;;  %vm239_vm5 = vcmask 257024  }
   0x4   :  { %s307_s1 = smov 112   ;;  %v146_v50 = vld [vmem:[%s394_s3] sm:$0xf]  ;;  %s308_s9 = smov 16  }
   0x5   :  { %v147_v51 = vld [vmem:[%s395_s4] sm:$0xf]  ;;  %s309_s16 = smov 0.0  }
   0x6   :  { %44 = vrot.lane.b32.xlu1 %v20_v0, %s298_s22  ;;  %30 = vrot.lane.b32.xlu0 %v20_v0, %s299_s23 }
   0xa   :  { %34 = vrot.lane.b32.xlu1 %v20_v0, %s302_s24  ;;  %22 = vrot.lane.b32.xlu0 %v20_v0, %s303_s25 }
   0xe   :  { %48 = vrot.lane.b32.xlu1 %v20_v0, %s305_s0  ;;  %37 = vrot.lane.b32.xlu0 %v20_v0, %s306_s26 }
  0x12   :  { %65 = vperm.xlu0 %290, %v62_v4  }
  0x74   :  { %v42_v5 = vpop.permute.xlu1 %41  ;;  %v28_v6 = vpop.permute.xlu0 %27 }
  0x78   :  { %v31_v7 = vpop.permute.xlu0 %30  ;;  %v45_v8 = vpop.permute.xlu1 %44 }
  0x79   :  { %v47_v10 = vsel %vm25_vm1, %v42_v5, %v45_v8  ;;  %v33_v11 = vsel %vm25_vm1, %v28_v6, %v31_v7 }
  0x7a   :  { %v56_v14 = vrot.slane %v47_v10, 4  ;;  %v53_v15 = vrot.slane %v33_v11, 4 }
  0x7c   :  { %v23_v9 = vpop.permute.xlu0 %22  ;;  %v348_v12 = vpop.permute.xlu1 %34 }
  0x7d   :  { %v26_v13 = vsel %vm25_vm1, %v20_v0, %v23_v9 }
  0x7e   :  { %v59_v18 = vsel %vm58_vm2, %v26_v13, %v53_v15 }
  0x80   :  { %v351_v16 = vpop.permute.xlu0 %37  ;;  %v49_v21 = vpop.permute.xlu1 %48 }
  0x81   :  { %v40_v17 = vsel %vm25_vm1, %v348_v12, %v351_v16  ;;  %v51_v23 = vsel %vm25_vm1, %v23_v9, %v49_v21 }
  0x82   :  { %v60_v19 = vsel %vm58_vm2, %v40_v17, %v56_v14 }
  0x83   :  { %v261_v20 = vpack.c.bf16 %v60_v19, %v59_v18 }
  0x85   :  { %262 = vmatpush3.bf16.msra.mxu0 %v261_v20 }
  0x86   :  { %255 = vmatprep.subr.mxu0 %v301_v2 }
  0x89   :  { %256 = vmatpush3.msk.msra.mxu0 %vm58_vm2, %v51_v23 }
  0x8a   :  { %258 = vmatmul.mubr.msk.f32.vlgmr.msra.gmra.mrb[0].mxu0 %vm68_vm3, %v61_v22 }
  0x91   :  { %v66_v24 = vpop.permute.xlu0 %65 }
 0x15d   :  { %v141_v25 = vpop.f32.mrb[0].mxu0 }
 0x15e   :  { %v142_v26 = vadd.f32 %v141_v25, %v66_v24  ;;  %v259_v27 = vpop.f32.mrb[1].mxu0 }
 0x160   :  { %v360_v28 = vmax.f32 %v142_v26, 0.0 }
 0x162   :  { %v149_v29 = vsel %vm148_vm4, %v360_v28, 0.0  ;;  %v160_v30 = vmul.f32 %v360_v28, %v360_v28 }
 0x163   :  { %150 = vadd.xlane.f32.xlu1 %v149_v29 }
 0x164   :  { %v161_v31 = vsel %vm148_vm4, %v160_v30, 0.0 }
 0x165   :  { %162 = vadd.xlane.f32.xlu0 %v161_v31 }
 0x174   :  { %187 = vrot.lane.b32.xlu1 %v360_v28, %s307_s1 }
 0x17b   :  { %202 = vrot.lane.b32.xlu0 %v160_v30, %s307_s1 }
 0x1f0   :  { %v151_v32 = vpop.xlane.xlu1 %150 }
 0x1f1   :  { %v152_v33 = vrot.slane %v151_v32, 4 }
 0x1f2   :  { %v163_v34 = vpop.xlane.xlu0 %162 }
 0x1f3   :  { %v153_v35 = vadd.f32 %v152_v33, %v151_v32  ;;  %v164_v36 = vrot.slane %v163_v34, 4 }
 0x1f4   :  { %v188_v37 = vpop.permute.xlu1 %187 }
 0x1f5   :  { %v154_v38 = vrot.slane %v153_v35, 2  ;;  %v165_v39 = vadd.f32 %v164_v36, %v163_v34  ;;  %v190_v40 = vsel %vm148_vm4, %v188_v37, 0.0 }
 0x1f6   :  { %v203_v41 = vpop.permute.xlu0 %202  ;;  %191 = vadd.xlane.f32.xlu1 %v190_v40 }
 0x1f7   :  { %v166_v42 = vrot.slane %v165_v39, 2  ;;  %v205_v43 = vsel %vm148_vm4, %v203_v41, 0.0  ;;  %v155_v44 = vadd.f32 %v154_v38, %v153_v35 }
 0x1f8   :  { %206 = vadd.xlane.f32.xlu0 %v205_v43 }
 0x1f9   :  { %v156_v45 = vrot.slane %v155_v44, 1  ;;  %v167_v46 = vadd.f32 %v166_v42, %v165_v39 }
 0x1fb   :  { %v157_v47 = vadd.f32 %v156_v45, %v155_v44  ;;  %v168_v48 = vrot.slane %v167_v46, 1 }
 0x1fd   :  { %263 = vpush %v157_v47  ;;  %v169_v49 = vadd.f32 %v168_v48, %v167_v46 }
 0x1ff   :  { %265 = vpush %v169_v49 }
 0x207   :  { %228 = vrot.lane.b32.xlu1 %v146_v50, %s308_s9 }
 0x20e   :  { %233 = vrot.lane.b32.xlu0 %v147_v51, %s308_s9 }
 0x22e   :  { %s264_s10 = spop %263 }
 0x22f   :  { %s376_s11 = smul.f32 0.015625, %s264_s10 }
 0x230   :  { %s266_s12 = spop %265 }
 0x231   :  { %s172_s13 = smul.f32 %s376_s11, %s376_s11  ;;  %v179_v6 = vstv %s376_s11 }
 0x232   :  { %s171_s14 = smul.f32 0.015625, %s266_s12  ;;  %v180_v8 = vsub.f32 %v360_v28, %v179_v6 }
 0x234   :  { %s173_s15 = ssub.f32 %s171_s14, %s172_s13 }
 0x236   :  { %s174_s17 = smax.f32 %s309_s16, %s173_s15 }
 0x237   :  { %s175_s3 = sadd.f32 1e-05, %s174_s17 }
 0x239   :  { %v176_v52 = vstv %s175_s3 }
 0x23a   :  { %291 = vrsqrt.f32 %v176_v52 }
 0x244   :  { %v292_v53 = vpop.eup %291 }
 0x245   :  { %267 = vpush %v292_v53 }
 0x276   :  { %s268_s4 = spop %267 }
 0x277   :  { %v181_v7 = vstv %s268_s4 }
 0x278   :  { %v182_v9 = vmul.f32 %v181_v7, %v180_v8 }
 0x27a   :  { %v183_v11 = vmul.f32 %v182_v9, %v146_v50 }
 0x27c   :  { %v184_v19 = vadd.f32 %v183_v11, %v147_v51 }
 0x27e   :  { %v185_v22 = vadd.f32 %v184_v19, %v348_v12 }
 0x283   :  { %v192_v54 = vpop.xlane.xlu1 %191 }
 0x284   :  { %v193_v55 = vrot.slane %v192_v54, 4 }
 0x285   :  { %v207_v56 = vpop.xlane.xlu0 %206 }
 0x286   :  { %v194_v57 = vadd.f32 %v193_v55, %v192_v54  ;;  %v208_v58 = vrot.slane %v207_v56, 4 }
 0x287   :  { %v229_v15 = vpop.permute.xlu1 %228 }
 0x288   :  { %v195_v59 = vrot.slane %v194_v57, 2  ;;  %v209_v60 = vadd.f32 %v208_v58, %v207_v56 }
 0x289   :  { %v234_v18 = vpop.permute.xlu0 %233 }
 0x28a   :  { %v210_v61 = vrot.slane %v209_v60, 2  ;;  %v196_v62 = vadd.f32 %v195_v59, %v194_v57 }
 0x28c   :  { %v197_v63 = vrot.slane %v196_v62, 1  ;;  %v211_v0 = vadd.f32 %v210_v61, %v209_v60 }
 0x28e   :  { %v198_v1 = vadd.f32 %v197_v63, %v196_v62  ;;  %v212_v2 = vrot.slane %v211_v0, 1 }
 0x290   :  { %269 = vpush %v198_v1  ;;  %v213_v3 = vadd.f32 %v212_v2, %v211_v0 }
 0x292   :  { %271 = vpush %v213_v3 }
 0x2c1   :  { %s270_s18 = spop %269 }
 0x2c2   :  { %s200_s19 = smul.f32 0.015625, %s270_s18 }
 0x2c3   :  { %s272_s20 = spop %271 }
 0x2c4   :  { %s216_s21 = smul.f32 %s200_s19, %s200_s19  ;;  %v223_v10 = vstv %s200_s19 }
 0x2c5   :  { %s215_s22 = smul.f32 0.015625, %s272_s20  ;;  %v224_v13 = vsub.f32 %v360_v28, %v223_v10 }
 0x2c7   :  { %s217_s23 = ssub.f32 %s215_s22, %s216_s21 }
 0x2c9   :  { %s218_s24 = smax.f32 %s309_s16, %s217_s23 }
 0x2ca   :  { %s219_s25 = sadd.f32 1e-05, %s218_s24 }
 0x2cc   :  { %v220_v4 = vstv %s219_s25 }
 0x2cd   :  { %293 = vrsqrt.f32 %v220_v4 }
 0x2d7   :  { %v294_v5 = vpop.eup %293 }
 0x2d8   :  { %273 = vpush %v294_v5 }
 0x309   :  { %s274_s0 = spop %273 }
 0x30a   :  { %v225_v14 = vstv %s274_s0 }
 0x30b   :  { %v226_v17 = vmul.f32 %v225_v14, %v224_v13 }
 0x30d   :  { %v231_v20 = vmul.f32 %v229_v15, %v226_v17 }
 0x30f   :  { %v236_v21 = vadd.f32 %v234_v18, %v231_v20 }
 0x311   :  { %v237_v23 = vadd.f32 %v236_v21, %v351_v16 }
 0x313   :  { %v238_v24 = vsel %vm25_vm1, %v185_v22, %v237_v23 }
 0x314   :  { %240 = vst.msk [vmem:[%s396_s5] sm:$0xf] %vm239_vm5, %v238_v24 }

</bundles_post_ra>
